<compile_context>
chip_gen: v6e
topology: v6e:2x2x1
jax: 0.10.0
libtpu: 0.0.40
codegen_flags: <defaults>
</compile_context>

<pallas_src>
import jax
import jax.numpy as jnp
from jax.experimental import pallas as pl
from jax.experimental.pallas import tpu as pltpu


# --------------------------------------------------------------------------
# Fused CALayer kernel: pool -> 1x1 conv -> ReLU -> 1x1 conv -> sigmoid -> scale
# --------------------------------------------------------------------------
def _ca_kernel(x_ref, w1_ref, w2_ref, o_ref):
    xb = x_ref[...]                                   # (Bt, C, S), lane-dense in S
    bt = xb.shape[0]
    xf = xb.astype(jnp.float32)

    # AdaptiveAvgPool2d(1): mean over the spatial (lane) axis -> (Bt, C, 1),
    # channels stay on sublanes (same layout as xb).
    pooled = jnp.sum(xf, axis=-1, keepdims=True) * (1.0 / xb.shape[-1])

    # conv_du: Conv2d(C, C//r, 1) -> ReLU -> Conv2d(C//r, C, 1) -> Sigmoid (bias=False).
    # Weights are broadcast along the batch dim so both einsum operands carry the batch
    # dim (pure batched dot_general, no transpose, no lane<->sublane relayout of the
    # gate before the big multiply).  A few hundred FLOPs — hidden under the DMA.
    w1b = jnp.broadcast_to(w1_ref[...], (bt,) + tuple(w1_ref.shape))    # (Bt, C//r, C)
    w2b = jnp.broadcast_to(w2_ref[...], (bt,) + tuple(w2_ref.shape))    # (Bt, C, C//r)
    hid = jnp.maximum(
        jnp.einsum("brc,bcx->brx", w1b, pooled, preferred_element_type=jnp.float32),
        0.0,
    )                                                                    # (Bt, C//r, 1)
    gate = jax.nn.sigmoid(
        jnp.einsum("bcr,brx->bcx", w2b, hid, preferred_element_type=jnp.float32)
    )                                                                    # (Bt, C, 1)

    # x * y : per-channel gate, broadcast along the spatial lanes.
    o_ref[...] = (xf * gate).astype(o_ref.dtype)


# --------------------------------------------------------------------------
# Block-size selection: ~2 MiB blocks, but keep >=8 grid steps when B allows
# (pipeline depth + v7x megacore split), never below a 512 KiB block.
# --------------------------------------------------------------------------
_TARGET_BLOCK_BYTES = 2 << 20
_MIN_BLOCK_BYTES = 512 << 10


def _pick_batch_tile(B, per_batch_bytes):
    bt = int(max(1, min(B, _TARGET_BLOCK_BYTES // per_batch_bytes)))
    while (
        bt > 1
        and pl.cdiv(B, bt) < 8
        and ((bt + 1) // 2) * per_batch_bytes >= _MIN_BLOCK_BYTES
    ):
        bt = (bt + 1) // 2
    return bt


def ca_layer(x, w1, w2, *, donate_x=False):
    """x: (B, C, H, W); w1: (C//r, C); w2: (C, C//r). Returns (B, C, H, W)."""
    B, C, H, W = x.shape
    S = H * W
    x3 = x.reshape(B, C, S)                # trailing-dims merge: no data movement

    per_batch = C * S * x3.dtype.itemsize
    bt = _pick_batch_tile(B, per_batch)
    steps = int(pl.cdiv(B, bt))
    b_pad = steps * bt
    if b_pad != B:
        # Batch rows are independent: pad to a whole number of blocks, slice after.
        x3 = jnp.pad(x3, ((0, b_pad - B), (0, 0), (0, 0)))

    # Double-buffered input + output blocks + resident weights + slack; capped at
    # 48 MiB so the request is valid on v7x (64 MiB physical VMEM).
    block_bytes = bt * per_batch
    vmem_limit = int(min(max(4 * block_bytes + (4 << 20), 16 << 20), 48 << 20))

    out = pl.pallas_call(
        _ca_kernel,
        out_shape=jax.ShapeDtypeStruct((b_pad, C, S), x3.dtype),
        grid=(steps,),
        in_specs=[
            pl.BlockSpec((bt, C, S), lambda b: (b, 0, 0)),   # Bt batch slabs per step
            pl.BlockSpec(w1.shape, lambda b: (0, 0)),        # small weights, resident
            pl.BlockSpec(w2.shape, lambda b: (0, 0)),
        ],
        out_specs=pl.BlockSpec((bt, C, S), lambda b: (b, 0, 0)),   # lane-dense (S) output
        compiler_params=pltpu.CompilerParams(
            dimension_semantics=("parallel",),               # v7x: split batch blocks across TCs
            vmem_limit_bytes=vmem_limit,
        ),
        # x is read exactly once and fully overwritten block-by-block, so its HBM
        # buffer can be reused when the caller no longer needs x.
        input_output_aliases={0: 0} if donate_x else {},
    )(x3, w1, w2)

    # TODO(synk): if a single (C, S) slab ever exceeds the pipelined VMEM budget
    # (> ~6 MiB per block), switch to an emit_pipeline over spatial chunks that keeps
    # the slab resident in VMEM scratch (pool, gate, then stream the scaled writeback)
    # so x is still read exactly once — do NOT fall back to a two-pass pool-then-scale.
    if b_pad != B:
        out = out[:B]
    return out.reshape(B, C, H, W)


# --------------------------------------------------------------------------
# Pure-JAX reference (mirrors the PyTorch forward) for a correctness check
# --------------------------------------------------------------------------
def ca_layer_ref(x, w1, w2):
    y = jnp.mean(x, axis=(2, 3), keepdims=True)                   # (B, C, 1, 1)
    y = jnp.einsum("rc,bcij->brij", w1, y)
    y = jnp.maximum(y, 0.0)
    y = jnp.einsum("cr,brij->bcij", w2, y)
    y = jax.nn.sigmoid(y)
    return x * y


if __name__ == "__main__":
    key = jax.random.PRNGKey(0)
    kx, k1, k2 = jax.random.split(key, 3)

    # channel=64, reduction=16 (module defaults), batch=2, 16x16 spatial
    B, C, H, W = 2, 64, 16, 16
    R = 16
    x = jax.random.normal(kx, (B, C, H, W), jnp.float32)
    w1 = jax.random.uniform(k1, (C // R, C), jnp.float32, -0.1, 0.1)   # Conv2d(C, C//r, 1, bias=False)
    w2 = jax.random.uniform(k2, (C, C // R), jnp.float32, -0.1, 0.1)   # Conv2d(C//r, C, 1, bias=False)

    out = jax.jit(ca_layer)(x, w1, w2)
    jax.block_until_ready(out)

    assert out.shape == (B, C, H, W) and out.dtype == jnp.float32
    ref = ca_layer_ref(x, w1, w2)
    assert bool(jnp.allclose(out, ref, atol=1e-4, rtol=1e-4)), float(
        jnp.max(jnp.abs(out - ref))
    )
    print("KERNEL_OK")
</pallas_src>

<mosaic_0001>
module attributes {stable_mosaic.version = 11 : i64} {
  func.func @_ca_kernel(%arg0: i32, %arg1: memref<2x64x256xf32, #tpu.memory_space<vmem>>, %arg2: memref<4x64xf32, #tpu.memory_space<vmem>>, %arg3: memref<64x4xf32, #tpu.memory_space<vmem>>, %arg4: memref<2x64x256xf32, #tpu.memory_space<vmem>>) attributes {dimension_semantics = [#tpu.dimension_semantics<parallel>], iteration_bounds = array<i64: 1>, scalar_prefetch = 0 : i64, scratch_operands = 0 : i64, tpu.core_type = #tpu.core_type<tc>, window_params = [{transform_indices = @transform_0, window_bounds = array<i64: 2, 64, 256>}, {pipeline_mode = #tpu.pipeline_mode<synchronous>, transform_indices = @transform_1, window_bounds = array<i64: 4, 64>}, {pipeline_mode = #tpu.pipeline_mode<synchronous>, transform_indices = @transform_2, window_bounds = array<i64: 64, 4>}, {transform_indices = @transform_3, window_bounds = array<i64: 2, 64, 256>}]} {
    %c0 = arith.constant 0 : index
    %c0_0 = arith.constant 0 : index
    %c0_1 = arith.constant 0 : index
    %0 = vector.load %arg1[%c0, %c0_0, %c0_1] : memref<2x64x256xf32, #tpu.memory_space<vmem>>, vector<2x64x256xf32>
    %cst = arith.constant dense<0.000000e+00> : vector<2x64xf32>
    %1 = vector.multi_reduction <add>, %0, %cst [2] : vector<2x64x256xf32> to vector<2x64xf32>
    %2 = vector.shape_cast %1 : vector<2x64xf32> to vector<2x64x1xf32>
    %cst_2 = arith.constant 3.906250e-03 : f32
    %3 = vector.broadcast %cst_2 : f32 to vector<2x64x1xf32>
    %4 = arith.mulf %2, %3 : vector<2x64x1xf32>
    %c0_3 = arith.constant 0 : index
    %c0_4 = arith.constant 0 : index
    %5 = vector.load %arg2[%c0_3, %c0_4] : memref<4x64xf32, #tpu.memory_space<vmem>>, vector<4x64xf32>
    %6 = vector.shape_cast %5 : vector<4x64xf32> to vector<1x4x64xf32>
    %7 = vector.broadcast %6 : vector<1x4x64xf32> to vector<2x4x64xf32>
    %c0_5 = arith.constant 0 : index
    %c0_6 = arith.constant 0 : index
    %8 = vector.load %arg3[%c0_5, %c0_6] : memref<64x4xf32, #tpu.memory_space<vmem>>, vector<64x4xf32>
    %9 = vector.shape_cast %8 : vector<64x4xf32> to vector<1x64x4xf32>
    %10 = vector.broadcast %9 : vector<1x64x4xf32> to vector<2x64x4xf32>
    "tpu.trace_start"() <{level = 10 : i32, message = "brc,bcx->brx"}> : () -> ()
    %cst_7 = arith.constant dense<0.000000e+00> : vector<2x4x1xf32>
    %11 = tpu.matmul %7, %4, %cst_7 {dimension_numbers = #tpu.dot_dimension_numbers<[2], [1], [1], [2], [0, 0, 0, 1, 1, 2], [0], [0]>} : vector<2x4x64xf32>, vector<2x64x1xf32>, vector<2x4x1xf32> -> vector<2x4x1xf32>
    "tpu.trace_stop"() : () -> ()
    %cst_8 = arith.constant 0.000000e+00 : f32
    %12 = vector.broadcast %cst_8 : f32 to vector<2x4x1xf32>
    %13 = arith.maximumf %11, %12 : vector<2x4x1xf32>
    "tpu.trace_start"() <{level = 10 : i32, message = "bcr,brx->bcx"}> : () -> ()
    %cst_9 = arith.constant dense<0.000000e+00> : vector<2x64x1xf32>
    %14 = tpu.matmul %10, %13, %cst_9 {dimension_numbers = #tpu.dot_dimension_numbers<[2], [1], [1], [2], [0, 0, 0, 1, 1, 2], [0], [0]>} : vector<2x64x4xf32>, vector<2x4x1xf32>, vector<2x64x1xf32> -> vector<2x64x1xf32>
    "tpu.trace_stop"() : () -> ()
    %15 = arith.negf %14 : vector<2x64x1xf32>
    %16 = math.exp %15 : vector<2x64x1xf32>
    %cst_10 = arith.constant 1.000000e+00 : f32
    %17 = vector.broadcast %cst_10 : f32 to vector<2x64x1xf32>
    %18 = arith.addf %17, %16 : vector<2x64x1xf32>
    %19 = arith.divf %17, %18 : vector<2x64x1xf32>
    %20 = vector.broadcast %19 : vector<2x64x1xf32> to vector<2x64x256xf32>
    %21 = arith.mulf %0, %20 : vector<2x64x256xf32>
    %c0_11 = arith.constant 0 : index
    %c0_12 = arith.constant 0 : index
    %c0_13 = arith.constant 0 : index
    %22 = vector.load %arg4[%c0_11, %c0_12, %c0_13] : memref<2x64x256xf32, #tpu.memory_space<vmem>>, vector<2x64x256xf32>
    tpu.vector_store %arg4[%c0_11, %c0_12, %c0_13], %21 {strides = array<i32>} : memref<2x64x256xf32, #tpu.memory_space<vmem>>, vector<2x64x256xf32>,
    return
  }
  func.func @transform_0(%arg0: i32) -> (i32, i32, i32) {
    %c0_i32 = arith.constant 0 : i32
    %c0_i32_0 = arith.constant 0 : i32
    %c0_i32_1 = arith.constant 0 : i32
    return %arg0, %c0_i32, %c0_i32_0 : i32, i32, i32
  }
  func.func @transform_1(%arg0: i32) -> (i32, i32) {
    %c0_i32 = arith.constant 0 : i32
    %c0_i32_0 = arith.constant 0 : i32
    %c0_i32_1 = arith.constant 0 : i32
    return %c0_i32, %c0_i32_0 : i32, i32
  }
  func.func @transform_2(%arg0: i32) -> (i32, i32) {
    %c0_i32 = arith.constant 0 : i32
    %c0_i32_0 = arith.constant 0 : i32
    %c0_i32_1 = arith.constant 0 : i32
    return %c0_i32, %c0_i32_0 : i32, i32
  }
  func.func @transform_3(%arg0: i32) -> (i32, i32, i32) {
    %c0_i32 = arith.constant 0 : i32
    %c0_i32_0 = arith.constant 0 : i32
    %c0_i32_1 = arith.constant 0 : i32
    return %arg0, %c0_i32, %c0_i32_0 : i32, i32, i32
  }
}

</mosaic_0001>

<bundles_post_ra>
// kernel: ca_layer.1
= control target key start
LH: loop header
LB: loop body
LE: loop exit
PB: predicated region body
PF: predicated region fallthrough
CT: control target
= control target key end

     0   :  { %v958_v29 = vmov 0.0   ;;  %vm959_vm0 = vmmov 0   ;;  %vm119_vm1 = vcmask 523264   ;;  %vm265_vm2 = vcmask 31744   ;;  %s1362_s0 = inlined_call_operand.vmem [shape: f32[2,64,256], index: 0, kind: input, shape index: {}]   ;;  %s1363_s1 = inlined_call_operand.vmem [shape: f32[4,64], index: 1, kind: input, shape index: {}]   ;;  %s1364_s2 = inlined_call_operand.vmem [shape: f32[64,4], index: 2, kind: input, shape index: {}]   ;;  %s1365_s3 = inlined_call_operand.vmem [shape: f32[2,64,256], index: 3, kind: output, shape index: {}]  }
   0x1   :  { %v984_v0 = vld [vmem:[%s1362_s0 + $0x70] sm:$0xff]  ;;  %v989_v1 = vld [vmem:[%s1362_s0 + $0x78] sm:$0xff]  ;;  %v994_v2 = vld [vmem:[%s1362_s0 + $0x60] sm:$0xff]  ;;  %823 = vmatprep.subr.mxu0 %v958_v29  ;;  %842 = vmatprep.subr.mxu1 %v958_v29  ;;  %vm290_vm3 = vcmask 1043456  }
   0x2   :  { %v67_v3 = vadd.f32 %v989_v1, %v984_v0  ;;  %v1001_v4 = vld [vmem:[%s1362_s0 + $0x68] sm:$0xff]  ;;  %v1006_v5 = vld [vmem:[%s1362_s0 + $0xf0] sm:$0xff]  ;;  %v1011_v6 = vld [vmem:[%s1362_s0 + $0xf8] sm:$0xff]  ;;  %839 = vmatprep.mubr.msk.f32.mxu0 %vm959_vm0, %v958_v29  ;;  %858 = vmatprep.mubr.msk.f32.mxu1 %vm959_vm0, %v958_v29 }
   0x3   :  { %v64_v7 = vadd.f32 %v1001_v4, %v994_v2  ;;  %v1018_v8 = vld [vmem:[%s1362_s0 + $0xe0] sm:$0xff]  ;;  %v1023_v9 = vld [vmem:[%s1362_s0 + $0xe8] sm:$0xff]  ;;  %v91_v10 = vadd.f32 %v1011_v6, %v1006_v5  ;;  %v1032_v12 = vld [vmem:[%s1362_s0 + $0x50] sm:$0xff] }
   0x4   :  { %68 = vadd.xlane.f32.xlu0 %v67_v3  ;;  %v88_v11 = vadd.f32 %v1023_v9, %v1018_v8  ;;  %v1037_v13 = vld [vmem:[%s1362_s0 + $0x58] sm:$0xff]  ;;  %v1042_v14 = vld [vmem:[%s1362_s0 + $0xd0] sm:$0xff]  ;;  %v1056_v18 = vld [vmem:[%s1362_s0 + $0x40] sm:$0xff] }
   0x5   :  { %65 = vadd.xlane.f32.xlu1 %v64_v7  ;;  %v1047_v15 = vld [vmem:[%s1362_s0 + $0xd8] sm:$0xff]  ;;  %v61_v16 = vadd.f32 %v1037_v13, %v1032_v12  ;;  %v1061_v19 = vld [vmem:[%s1362_s0 + $0x48] sm:$0xff]  ;;  %v1066_v20 = vld [vmem:[%s1362_s0 + $0xc0] sm:$0xff] }
   0x6   :  { %v85_v17 = vadd.f32 %v1047_v15, %v1042_v14  ;;  %v1071_v21 = vld [vmem:[%s1362_s0 + $0xc8] sm:$0xff]  ;;  %v58_v22 = vadd.f32 %v1061_v19, %v1056_v18  ;;  %v1080_v24 = vld [vmem:[%s1362_s0 + $0x30] sm:$0xff]  ;;  %v1085_v25 = vld [vmem:[%s1362_s0 + $0x38] sm:$0xff] }
   0x7   :  { %v82_v23 = vadd.f32 %v1071_v21, %v1066_v20  ;;  %v1090_v26 = vld [vmem:[%s1362_s0 + $0xb0] sm:$0xff]  ;;  %v1095_v27 = vld [vmem:[%s1362_s0 + $0xb8] sm:$0xff]  ;;  %v55_v28 = vadd.f32 %v1085_v25, %v1080_v24  ;;  %v1105_v31 = vld [vmem:[%s1362_s0 + $0x20] sm:$0xff] }
   0x8   :  { %92 = vadd.xlane.f32.xlu0 %v91_v10  ;;  %v79_v30 = vadd.f32 %v1095_v27, %v1090_v26  ;;  %v1110_v32 = vld [vmem:[%s1362_s0 + $0x28] sm:$0xff]  ;;  %v1116_v33 = vld [vmem:[%s1362_s0 + $0xa0] sm:$0xff]  ;;  %v1130_v37 = vld [vmem:[%s1362_s0 + $0x10] sm:$0xff] }
   0x9   :  { %89 = vadd.xlane.f32.xlu1 %v88_v11  ;;  %v1121_v34 = vld [vmem:[%s1362_s0 + $0xa8] sm:$0xff]  ;;  %v52_v35 = vadd.f32 %v1110_v32, %v1105_v31  ;;  %v1135_v38 = vld [vmem:[%s1362_s0 + $0x18] sm:$0xff]  ;;  %v1140_v39 = vld [vmem:[%s1362_s0 + $0x90] sm:$0xff] }
   0xa   :  { %v76_v36 = vadd.f32 %v1121_v34, %v1116_v33  ;;  %v1145_v40 = vld [vmem:[%s1362_s0 + $0x98] sm:$0xff]  ;;  %v49_v41 = vadd.f32 %v1135_v38, %v1130_v37  ;;  %v1154_v43 = vld [vmem:[%s1362_s0] sm:$0xff]  ;;  %v1159_v44 = vld [vmem:[%s1362_s0 + $0x8] sm:$0xff] }
   0xb   :  { %v73_v42 = vadd.f32 %v1145_v40, %v1140_v39  ;;  %v1164_v45 = vld [vmem:[%s1362_s0 + $0x80] sm:$0xff]  ;;  %v1169_v46 = vld [vmem:[%s1362_s0 + $0x88] sm:$0xff]  ;;  %v46_v47 = vadd.f32 %v1159_v44, %v1154_v43 }
   0xc   :  { %62 = vadd.xlane.f32.xlu0 %v61_v16  ;;  %v70_v48 = vadd.f32 %v1169_v46, %v1164_v45 }
   0xd   :  { %86 = vadd.xlane.f32.xlu1 %v85_v17 }
  0x10   :  { %59 = vadd.xlane.f32.xlu0 %v58_v22 }
  0x11   :  { %83 = vadd.xlane.f32.xlu1 %v82_v23 }
  0x14   :  { %56 = vadd.xlane.f32.xlu0 %v55_v28 }
  0x15   :  { %80 = vadd.xlane.f32.xlu1 %v79_v30 }
  0x18   :  { %53 = vadd.xlane.f32.xlu0 %v52_v35 }
  0x19   :  { %77 = vadd.xlane.f32.xlu1 %v76_v36 }
  0x1c   :  { %50 = vadd.xlane.f32.xlu0 %v49_v41 }
  0x1d   :  { %74 = vadd.xlane.f32.xlu1 %v73_v42 }
  0x20   :  { %47 = vadd.xlane.f32.xlu0 %v46_v47 }
  0x21   :  { %71 = vadd.xlane.f32.xlu1 %v70_v48 }
  0x8d   :  { %v69_v49 = vpop.xlane.xlu0 %68 }
  0x8e   :  { %v101_v50 = vmul.f32 0.00390625, %v69_v49  ;;  %v66_v51 = vpop.xlane.xlu1 %65  ;;  %v110_v49 = vld [vmem:[%s1363_s1] sm:$0xf] }
  0x8f   :  { %v100_v52 = vmul.f32 0.00390625, %v66_v51  ;;  %v111_v51 = vld [vmem:[%s1364_s2] sm:$0xff] }
  0x90   :  { %824 = vmatpush3.msra.mxu0 %v101_v50 }
  0x91   :  { %825 = vmatprep.subr.mxu0 %v958_v29  ;;  %v93_v53 = vpop.xlane.xlu0 %92 }
  0x92   :  { %v109_v54 = vmul.f32 0.00390625, %v93_v53  ;;  %v90_v55 = vpop.xlane.xlu1 %89  ;;  %826 = vmatpush3.msra.mxu0 %v100_v52 }
  0x93   :  { %v108_v56 = vmul.f32 0.00390625, %v90_v55  ;;  %827 = vmatprep.subr.mxu0 %v958_v29 }
  0x94   :  { %843 = vmatpush3.msra.mxu1 %v109_v54 }
  0x95   :  { %844 = vmatprep.subr.mxu1 %v958_v29  ;;  %v63_v57 = vpop.xlane.xlu0 %62 }
  0x96   :  { %v87_v58 = vpop.xlane.xlu1 %86  ;;  %v99_v59 = vmul.f32 0.00390625, %v63_v57  ;;  %845 = vmatpush3.msra.mxu1 %v108_v56  ;;  %v112_v56 = vld [vmem:[%s1364_s2 + $0x8] sm:$0xff] }
  0x97   :  { %v107_v60 = vmul.f32 0.00390625, %v87_v58  ;;  %846 = vmatprep.subr.mxu1 %v958_v29  ;;  %v113_v58 = vld [vmem:[%s1364_s2 + $0x10] sm:$0xff] }
  0x98   :  { %828 = vmatpush3.msra.mxu0 %v99_v59  ;;  %v114_v59 = vld [vmem:[%s1364_s2 + $0x18] sm:$0xff] }
  0x99   :  { %v60_v61 = vpop.xlane.xlu0 %59  ;;  %847 = vmatpush3.msra.mxu1 %v107_v60  ;;  %829 = vmatprep.subr.mxu0 %v958_v29  ;;  %v115_v60 = vld [vmem:[%s1364_s2 + $0x20] sm:$0xff] }
  0x9a   :  { %v84_v62 = vpop.xlane.xlu1 %83  ;;  %v98_v63 = vmul.f32 0.00390625, %v60_v61  ;;  %848 = vmatprep.subr.mxu1 %v958_v29  ;;  %v116_v61 = vld [vmem:[%s1364_s2 + $0x28] sm:$0xff] }
  0x9b   :  { %v106_v3 = vmul.f32 0.00390625, %v84_v62  ;;  %v117_v62 = vld [vmem:[%s1364_s2 + $0x30] sm:$0xff] }
  0x9c   :  { %830 = vmatpush3.msra.mxu0 %v98_v63  ;;  %v118_v63 = vld [vmem:[%s1364_s2 + $0x38] sm:$0xff] }
  0x9d   :  { %v57_v7 = vpop.xlane.xlu0 %56  ;;  %849 = vmatpush3.msra.mxu1 %v106_v3  ;;  %831 = vmatprep.subr.mxu0 %v958_v29  ;;  %v960_v3 = vmov 0  }
  0x9e   :  { %v81_v10 = vpop.xlane.xlu1 %80  ;;  %v97_v11 = vmul.f32 0.00390625, %v57_v7  ;;  %850 = vmatprep.subr.mxu1 %v958_v29  ;;  %893 = vset.pattern.permute.xlu0 %v960_v3 }
  0x9f   :  { %v105_v16 = vmul.f32 0.00390625, %v81_v10  ;;  %892 = vset.pattern.permute.xlu1 %v960_v3 }
  0xa0   :  { %832 = vmatpush3.msra.mxu0 %v97_v11 }
  0xa1   :  { %v54_v17 = vpop.xlane.xlu0 %53  ;;  %851 = vmatpush3.msra.mxu1 %v105_v16  ;;  %833 = vmatprep.subr.mxu0 %v958_v29 }
  0xa2   :  { %v78_v22 = vpop.xlane.xlu1 %77  ;;  %v96_v23 = vmul.f32 0.00390625, %v54_v17  ;;  %852 = vmatprep.subr.mxu1 %v958_v29 }
  0xa3   :  { %v104_v28 = vmul.f32 0.00390625, %v78_v22 }
  0xa4   :  { %834 = vmatpush3.msra.mxu0 %v96_v23 }
  0xa5   :  { %v51_v30 = vpop.xlane.xlu0 %50  ;;  %853 = vmatpush3.msra.mxu1 %v104_v28  ;;  %835 = vmatprep.subr.mxu0 %v958_v29 }
  0xa6   :  { %v75_v35 = vpop.xlane.xlu1 %74  ;;  %v95_v36 = vmul.f32 0.00390625, %v51_v30  ;;  %854 = vmatprep.subr.mxu1 %v958_v29 }
  0xa7   :  { %v103_v41 = vmul.f32 0.00390625, %v75_v35 }
  0xa8   :  { %836 = vmatpush3.msra.mxu0 %v95_v36 }
  0xa9   :  { %v48_v42 = vpop.xlane.xlu0 %47  ;;  %855 = vmatpush3.msra.mxu1 %v103_v41  ;;  %837 = vmatprep.subr.mxu0 %v958_v29 }
  0xaa   :  { %v72_v47 = vpop.xlane.xlu1 %71  ;;  %v94_v48 = vmul.f32 0.00390625, %v48_v42  ;;  %856 = vmatprep.subr.mxu1 %v958_v29 }
  0xab   :  { %v102_v50 = vmul.f32 0.00390625, %v72_v47 }
  0xac   :  { %838 = vmatpush3.msra.mxu0 %v94_v48 }
  0xad   :  { %857 = vmatpush3.msra.mxu1 %v102_v50  ;;  %840 = vmatmul.mubr.msk.f32.vlgmr.msra.gmra.mxu0 %vm119_vm1, %v110_v49 }
  0xae   :  { %859 = vmatmul.mubr.msk.f32.vlgmr.msra.gmra.mxu1 %vm119_vm1, %v110_v49  ;;  %863 = vmatprep.mubr.msk.f32.mxu0 %vm265_vm2, %v111_v51 }
  0xaf   :  { %877 = vmatprep.mubr.msk.f32.mxu1 %vm265_vm2, %v111_v51 }
 0x16d   :  { %v189_v29 = vpop.f32.mrf.mxu0 }
 0x16e   :  { %v263_v52 = vmax.f32 %v189_v29, 0.0  ;;  %v259_v53 = vpop.f32.mrf.mxu1 }
 0x16f   :  { %v264_v54 = vmax.f32 %v259_v53, 0.0  ;;  %v841_v55 = vpop.f32.mrf.mxu0 }
 0x170   :  { %v860_v57 = vpop.f32.mrf.mxu1  ;;  %861 = vmatprep.subr.msk.mxu0 %vm290_vm3, %v263_v52 }
 0x171   :  { %875 = vmatprep.subr.msk.mxu1 %vm290_vm3, %v264_v54  ;;  %862 = vmatpush3.msk.msra.mxu0 %vm290_vm3, %v263_v52 }
 0x172   :  { %876 = vmatpush3.msk.msra.mxu1 %vm290_vm3, %v264_v54  ;;  %864 = vmatmul.mubr.msk.f32.vlgmr.msra.gmra.mxu0 %vm265_vm2, %v112_v56 }
 0x173   :  { %878 = vmatmul.mubr.msk.f32.vlgmr.msra.gmra.mxu1 %vm265_vm2, %v112_v56  ;;  %866 = vmatprep.mubr.msk.f32.mxu0 %vm265_vm2, %v113_v58 }
 0x174   :  { %880 = vmatprep.mubr.msk.f32.mxu1 %vm265_vm2, %v113_v58 }
 0x176   :  { %867 = vmatmul.mubr.msk.f32.gmra.mxu0 %vm265_vm2, %v114_v59 }
 0x177   :  { %881 = vmatmul.mubr.msk.f32.gmra.mxu1 %vm265_vm2, %v114_v59  ;;  %869 = vmatprep.mubr.msk.f32.mxu0 %vm265_vm2, %v115_v60 }
 0x178   :  { %883 = vmatprep.mubr.msk.f32.mxu1 %vm265_vm2, %v115_v60 }
 0x17a   :  { %870 = vmatmul.mubr.msk.f32.gmra.mxu0 %vm265_vm2, %v116_v61 }
 0x17b   :  { %884 = vmatmul.mubr.msk.f32.gmra.mxu1 %vm265_vm2, %v116_v61  ;;  %872 = vmatprep.mubr.msk.f32.mxu0 %vm265_vm2, %v117_v62 }
 0x17c   :  { %886 = vmatprep.mubr.msk.f32.mxu1 %vm265_vm2, %v117_v62 }
 0x17e   :  { %873 = vmatmul.mubr.msk.f32.gmra.mxu0 %vm265_vm2, %v118_v63 }
 0x17f   :  { %887 = vmatmul.mubr.msk.f32.gmra.mxu1 %vm265_vm2, %v118_v63 }
 0x232   :  { %v865_v7 = vpop.f32.mrf.mxu0 }
 0x233   :  { %v772_v10 = vmul.f32 -1.442695, %v865_v7  ;;  %v879_v11 = vpop.f32.mrf.mxu1 }
 0x234   :  { %v780_v16 = vmul.f32 -1.442695, %v879_v11  ;;  %v360_v17 = vpop.f32.mrf.mxu0 }
 0x235   :  { %894 = vpow2.f32 %v772_v10  ;;  %v771_v22 = vmul.f32 -1.442695, %v360_v17  ;;  %v468_v23 = vpop.f32.mrf.mxu1 }
 0x236   :  { %896 = vpow2.f32 %v780_v16  ;;  %v779_v28 = vmul.f32 -1.442695, %v468_v23  ;;  %v868_v30 = vpop.f32.mrf.mxu0 }
 0x237   :  { %898 = vpow2.f32 %v771_v22  ;;  %v774_v35 = vmul.f32 -1.442695, %v868_v30  ;;  %v882_v36 = vpop.f32.mrf.mxu1 }
 0x238   :  { %900 = vpow2.f32 %v779_v28  ;;  %v370_v41 = vpop.f32.mrf.mxu0  ;;  %v782_v42 = vmul.f32 -1.442695, %v882_v36 }
 0x239   :  { %902 = vpow2.f32 %v774_v35  ;;  %v773_v47 = vmul.f32 -1.442695, %v370_v41  ;;  %v478_v48 = vpop.f32.mrf.mxu1 }
 0x23a   :  { %904 = vpow2.f32 %v782_v42  ;;  %v781_v51 = vmul.f32 -1.442695, %v478_v48  ;;  %v871_v29 = vpop.f32.mrf.mxu0 }
 0x23b   :  { %v885_v49 = vpop.f32.mrf.mxu1  ;;  %906 = vpow2.f32 %v773_v47  ;;  %v776_v53 = vmul.f32 -1.442695, %v871_v29 }
 0x23c   :  { %v784_v50 = vmul.f32 -1.442695, %v885_v49  ;;  %v380_v56 = vpop.f32.mrf.mxu0 }
 0x23d   :  { %v488_v52 = vpop.f32.mrf.mxu1  ;;  %v775_v62 = vmul.f32 -1.442695, %v380_v56 }
 0x23e   :  { %908 = vpow2.f32 %v784_v50  ;;  %v874_v22 = vpop.f32.mrf.mxu0  ;;  %v783_v23 = vmul.f32 -1.442695, %v488_v52 }
 0x23f   :  { %v888_v54 = vpop.f32.mrf.mxu1  ;;  %910 = vpow2.f32 %v781_v51  ;;  %v778_v35 = vmul.f32 -1.442695, %v874_v22 }
 0x240   :  { %v786_v55 = vmul.f32 -1.442695, %v888_v54  ;;  %v390_v41 = vpop.f32.mrf.mxu0 }
 0x241   :  { %v777_v49 = vmul.f32 -1.442695, %v390_v41 }
 0x242   :  { %v895_v57 = vpop.eup %894  ;;  %912 = vpow2.f32 %v786_v55 }
 0x243   :  { %v897_v58 = vpop.eup %896  ;;  %v556_v59 = vadd.f32 1.0, %v895_v57  ;;  %914 = vpow2.f32 %v776_v53  ;;  %v498_v53 = vpop.f32.mrf.mxu1 }
 0x244   :  { %v899_v60 = vpop.eup %898  ;;  %v564_v61 = vadd.f32 1.0, %v897_v58  ;;  %v785_v57 = vmul.f32 -1.442695, %v498_v53 }
 0x245   :  { %v901_v63 = vpop.eup %900  ;;  %916 = vrcp.f32 %v556_v59  ;;  %v555_v7 = vadd.f32 1.0, %v899_v60 }
 0x246   :  { %v903_v3 = vpop.eup %902  ;;  %918 = vrcp.f32 %v564_v61  ;;  %v563_v10 = vadd.f32 1.0, %v901_v63 }
 0x247   :  { %v905_v11 = vpop.eup %904  ;;  %v558_v16 = vadd.f32 1.0, %v903_v3  ;;  %920 = vpow2.f32 %v775_v62 }
 0x248   :  { %v566_v17 = vadd.f32 1.0, %v905_v11  ;;  %922 = vrcp.f32 %v563_v10  ;;  %v907_v28 = vpop.eup %906 }
 0x249   :  { %924 = vrcp.f32 %v555_v7  ;;  %v557_v42 = vadd.f32 1.0, %v907_v28 }
 0x24a   :  { %926 = vrcp.f32 %v558_v16 }
 0x24b   :  { %v909_v30 = vpop.eup %908  ;;  %928 = vrcp.f32 %v566_v17 }
 0x24c   :  { %v568_v36 = vadd.f32 1.0, %v909_v30  ;;  %930 = vpow2.f32 %v783_v23  ;;  %v911_v47 = vpop.eup %910 }
 0x24d   :  { %932 = vpow2.f32 %v778_v35  ;;  %v565_v29 = vadd.f32 1.0, %v911_v47 }
 0x24e   :  { %934 = vrcp.f32 %v568_v36 }
 0x24f   :  { %v913_v48 = vpop.eup %912  ;;  %936 = vrcp.f32 %v557_v42 }
 0x250   :  { %v915_v50 = vpop.eup %914  ;;  %v570_v51 = vadd.f32 1.0, %v913_v48  ;;  %938 = vpow2.f32 %v777_v49 }
 0x251   :  { %v560_v55 = vadd.f32 1.0, %v915_v50 }
 0x252   :  { %v917_v52 = vpop.eup %916  ;;  %940 = vrcp.f32 %v570_v51 }
 0x253   :  { %v919_v54 = vpop.eup %918  ;;  %610 = vperm.xlu1 %892, %v917_v52   ;;  %942 = vrcp.f32 %v565_v29 }
 0x254   :  { %650 = vperm.xlu0 %893, %v919_v54   ;;  %v921_v56 = vpop.eup %920  ;;  %944 = vrcp.f32 %v560_v55 }
 0x255   :  { %v923_v58 = vpop.eup %922  ;;  %v559_v62 = vadd.f32 1.0, %v921_v56  ;;  %946 = vpow2.f32 %v785_v57 }
 0x256   :  { %v925_v59 = vpop.eup %924 }
 0x257   :  { %645 = vperm.xlu1 %892, %v923_v58   ;;  %v927_v60 = vpop.eup %926  ;;  %948 = vrcp.f32 %v559_v62 }
 0x258   :  { %605 = vperm.xlu0 %893, %v925_v59   ;;  %v929_v61 = vpop.eup %928 }
 0x259   :  { %v931_v63 = vpop.eup %930 }
 0x25a   :  { %v933_v3 = vpop.eup %932  ;;  %v567_v10 = vadd.f32 1.0, %v931_v63 }
 0x25b   :  { %620 = vperm.xlu1 %892, %v927_v60   ;;  %v935_v7 = vpop.eup %934  ;;  %v562_v16 = vadd.f32 1.0, %v933_v3 }
 0x25c   :  { %660 = vperm.xlu0 %893, %v929_v61   ;;  %v937_v11 = vpop.eup %936  ;;  %950 = vrcp.f32 %v567_v10 }
 0x25d   :  { %v939_v17 = vpop.eup %938  ;;  %952 = vrcp.f32 %v562_v16 }
 0x25e   :  { %v561_v30 = vadd.f32 1.0, %v939_v17 }
 0x25f   :  { %615 = vperm.xlu1 %892, %v937_v11   ;;  %v941_v22 = vpop.eup %940 }
 0x260   :  { %670 = vperm.xlu0 %893, %v935_v7   ;;  %v943_v23 = vpop.eup %942  ;;  %954 = vrcp.f32 %v561_v30 }
 0x261   :  { %v945_v28 = vpop.eup %944 }
 0x262   :  { %v947_v35 = vpop.eup %946 }
 0x263   :  { %655 = vperm.xlu1 %892, %v943_v23   ;;  %v569_v36 = vadd.f32 1.0, %v947_v35 }
 0x264   :  { %680 = vperm.xlu0 %893, %v941_v22   ;;  %v949_v41 = vpop.eup %948 }
 0x265   :  { %956 = vrcp.f32 %v569_v36 }
 0x267   :  { %630 = vperm.xlu1 %892, %v945_v28  }
 0x269   :  { %v951_v42 = vpop.eup %950 }
 0x26a   :  { %v953_v47 = vpop.eup %952 }
 0x26b   :  { %625 = vperm.xlu1 %892, %v949_v41  }
 0x26d   :  { %v955_v48 = vpop.eup %954 }
 0x26f   :  { %665 = vperm.xlu1 %892, %v951_v42  }
 0x272   :  { %v957_v49 = vpop.eup %956 }
 0x273   :  { %640 = vperm.xlu1 %892, %v953_v47  }
 0x277   :  { %635 = vperm.xlu1 %892, %v955_v48  }
 0x27b   :  { %675 = vperm.xlu1 %892, %v957_v49  }
 0x2ce   :  { %v611_v50 = vpop.permute.xlu1 %610 }
 0x2cf   :  { %v685_v51 = vmul.f32 %v611_v50, %v1130_v37  ;;  %v686_v29 = vmul.f32 %v611_v50, %v1135_v38  ;;  %v651_v52 = vpop.permute.xlu0 %650 }
 0x2d0   :  { %v701_v53 = vmul.f32 %v651_v52, %v1140_v39  ;;  %v702_v54 = vmul.f32 %v651_v52, %v1145_v40 }
 0x2d1   :  { %717 = vst [vmem:[%s1365_s3 + $0x10] sm:$0xff] %v685_v51  ;;  %718 = vst [vmem:[%s1365_s3 + $0x18] sm:$0xff] %v686_v29 }
 0x2d2   :  { %733 = vst [vmem:[%s1365_s3 + $0x90] sm:$0xff] %v701_v53  ;;  %734 = vst [vmem:[%s1365_s3 + $0x98] sm:$0xff] %v702_v54  ;;  %v646_v37 = vpop.permute.xlu1 %645 }
 0x2d3   :  { %v699_v38 = vmul.f32 %v646_v37, %v1164_v45  ;;  %v700_v39 = vmul.f32 %v646_v37, %v1169_v46  ;;  %v606_v40 = vpop.permute.xlu0 %605 }
 0x2d4   :  { %v683_v55 = vmul.f32 %v606_v40, %v1154_v43  ;;  %v684_v56 = vmul.f32 %v606_v40, %v1159_v44 }
 0x2d5   :  { %731 = vst [vmem:[%s1365_s3 + $0x80] sm:$0xff] %v699_v38  ;;  %732 = vst [vmem:[%s1365_s3 + $0x88] sm:$0xff] %v700_v39 }
 0x2d6   :  { %715 = vst [vmem:[%s1365_s3] sm:$0xff] %v683_v55  ;;  %716 = vst [vmem:[%s1365_s3 + $0x8] sm:$0xff] %v684_v56  ;;  %v621_v45 = vpop.permute.xlu1 %620 }
 0x2d7   :  { %v689_v43 = vmul.f32 %v621_v45, %v1080_v24  ;;  %v690_v44 = vmul.f32 %v621_v45, %v1085_v25  ;;  %v661_v46 = vpop.permute.xlu0 %660 }
 0x2d8   :  { %v705_v57 = vmul.f32 %v661_v46, %v1090_v26  ;;  %v706_v58 = vmul.f32 %v661_v46, %v1095_v27 }
 0x2d9   :  { %721 = vst [vmem:[%s1365_s3 + $0x30] sm:$0xff] %v689_v43  ;;  %722 = vst [vmem:[%s1365_s3 + $0x38] sm:$0xff] %v690_v44 }
 0x2da   :  { %v616_v59 = vpop.permute.xlu1 %615  ;;  %737 = vst [vmem:[%s1365_s3 + $0xb0] sm:$0xff] %v705_v57  ;;  %738 = vst [vmem:[%s1365_s3 + $0xb8] sm:$0xff] %v706_v58 }
 0x2db   :  { %v687_v24 = vmul.f32 %v616_v59, %v1105_v31  ;;  %v688_v25 = vmul.f32 %v616_v59, %v1110_v32  ;;  %v671_v26 = vpop.permute.xlu0 %670 }
 0x2dc   :  { %v709_v27 = vmul.f32 %v671_v26, %v1042_v14  ;;  %v710_v60 = vmul.f32 %v671_v26, %v1047_v15 }
 0x2dd   :  { %719 = vst [vmem:[%s1365_s3 + $0x20] sm:$0xff] %v687_v24  ;;  %720 = vst [vmem:[%s1365_s3 + $0x28] sm:$0xff] %v688_v25 }
 0x2de   :  { %v656_v61 = vpop.permute.xlu1 %655  ;;  %741 = vst [vmem:[%s1365_s3 + $0xd0] sm:$0xff] %v709_v27  ;;  %742 = vst [vmem:[%s1365_s3 + $0xd8] sm:$0xff] %v710_v60 }
 0x2df   :  { %v703_v14 = vmul.f32 %v656_v61, %v1116_v33  ;;  %v704_v15 = vmul.f32 %v656_v61, %v1121_v34  ;;  %v681_v31 = vpop.permute.xlu0 %680 }
 0x2e0   :  { %v713_v32 = vmul.f32 %v681_v31, %v1006_v5  ;;  %v714_v62 = vmul.f32 %v681_v31, %v1011_v6 }
 0x2e1   :  { %735 = vst [vmem:[%s1365_s3 + $0xa0] sm:$0xff] %v703_v14  ;;  %736 = vst [vmem:[%s1365_s3 + $0xa8] sm:$0xff] %v704_v15 }
 0x2e2   :  { %v631_v63 = vpop.permute.xlu1 %630  ;;  %745 = vst [vmem:[%s1365_s3 + $0xf0] sm:$0xff] %v713_v32  ;;  %746 = vst [vmem:[%s1365_s3 + $0xf8] sm:$0xff] %v714_v62 }
 0x2e3   :  { %v693_v5 = vmul.f32 %v631_v63, %v1032_v12  ;;  %v694_v6 = vmul.f32 %v631_v63, %v1037_v13 }
 0x2e5   :  { %725 = vst [vmem:[%s1365_s3 + $0x50] sm:$0xff] %v693_v5  ;;  %726 = vst [vmem:[%s1365_s3 + $0x58] sm:$0xff] %v694_v6 }
 0x2e6   :  { %v626_v33 = vpop.permute.xlu1 %625 }
 0x2e7   :  { %v691_v34 = vmul.f32 %v626_v33, %v1056_v18  ;;  %v692_v3 = vmul.f32 %v626_v33, %v1061_v19 }
 0x2e9   :  { %723 = vst [vmem:[%s1365_s3 + $0x40] sm:$0xff] %v691_v34  ;;  %724 = vst [vmem:[%s1365_s3 + $0x48] sm:$0xff] %v692_v3 }
 0x2ea   :  { %v666_v12 = vpop.permute.xlu1 %665 }
 0x2eb   :  { %v707_v13 = vmul.f32 %v666_v12, %v1066_v20  ;;  %v708_v7 = vmul.f32 %v666_v12, %v1071_v21 }
 0x2ed   :  { %739 = vst [vmem:[%s1365_s3 + $0xc0] sm:$0xff] %v707_v13  ;;  %740 = vst [vmem:[%s1365_s3 + $0xc8] sm:$0xff] %v708_v7 }
 0x2ee   :  { %v641_v18 = vpop.permute.xlu1 %640 }
 0x2ef   :  { %v697_v19 = vmul.f32 %v641_v18, %v984_v0  ;;  %v698_v10 = vmul.f32 %v641_v18, %v989_v1 }
 0x2f1   :  { %729 = vst [vmem:[%s1365_s3 + $0x70] sm:$0xff] %v697_v19  ;;  %730 = vst [vmem:[%s1365_s3 + $0x78] sm:$0xff] %v698_v10 }
 0x2f2   :  { %v636_v20 = vpop.permute.xlu1 %635 }
 0x2f3   :  { %v695_v21 = vmul.f32 %v636_v20, %v994_v2  ;;  %v696_v11 = vmul.f32 %v636_v20, %v1001_v4 }
 0x2f5   :  { %727 = vst [vmem:[%s1365_s3 + $0x60] sm:$0xff] %v695_v21  ;;  %728 = vst [vmem:[%s1365_s3 + $0x68] sm:$0xff] %v696_v11 }
 0x2f6   :  { %v676_v0 = vpop.permute.xlu1 %675 }
 0x2f7   :  { %v711_v1 = vmul.f32 %v676_v0, %v1018_v8  ;;  %v712_v16 = vmul.f32 %v676_v0, %v1023_v9 }
 0x2f9   :  { %743 = vst [vmem:[%s1365_s3 + $0xe0] sm:$0xff] %v711_v1  ;;  %744 = vst [vmem:[%s1365_s3 + $0xe8] sm:$0xff] %v712_v16 }

</bundles_post_ra>
